<compile_context>
chip_gen: v7x
topology: tpu7x:2x2x1
jax: 0.10.0
libtpu: 0.0.40
codegen_flags: <defaults>
</compile_context>

<pallas_src>
import jax
import jax.numpy as jnp
from jax import lax
from jax.experimental import pallas as pl
from jax.experimental.pallas import tpu as pltpu

_EPS = 1e-8  # matches _norm_no_nan's clamp


def _vector_layer_norm_kernel(xt_ref, gamma_ref, o_ref):
    """xt_ref: (3, TN, C) block, gamma_ref: (1, C), o_ref: (3, TN, C) block."""
    x = xt_ref[...].astype(jnp.float32)                  # (3, TN, C)
    sq = x * x
    # Per-(row, channel) squared L2 norm of the 3-vector: sum over leading axis
    # (element-wise adds over separate vregs — no cross-lane work).
    norm2 = sq[0] + sq[1] + sq[2]                        # (TN, C)
    norm2 = jnp.maximum(norm2, _EPS)                     # clamp(min=eps)
    # RMS over the channel axis (lane reduce), then reciprocal square root.
    mean = jnp.mean(norm2, axis=-1, keepdims=True)       # (TN, 1)
    inv_rms = lax.rsqrt(mean)                            # (TN, 1)
    scale = inv_rms * gamma_ref[...].astype(jnp.float32)  # (TN, C)
    o_ref[...] = (x * scale[None, :, :]).astype(o_ref.dtype)


def vector_layer_norm(x, gamma=None, *, block_rows=512):
    """Equivariant vector LayerNorm.

    x:     (N, C, 3)
    gamma: None, (C,), (1, C) or (1, C, 1)
    """
    n, c, d = x.shape
    assert d == 3, "last dim must be the xyz components"

    if gamma is None:
        gamma_arr = jnp.ones((1, c), x.dtype)
    else:
        gamma_arr = jnp.asarray(gamma).reshape(1, c).astype(x.dtype)

    # Lane-dense layout: (N, C, 3) -> (3, N, C)  (channel axis on lanes).
    xt = jnp.transpose(x, (2, 0, 1))

    if n <= block_rows:
        tn = n                      # full-extent block, no (8,128) constraint
        n_pad = n
        xt_p = xt
    else:
        tn = block_rows             # multiple of 8 by construction
        n_pad = pl.cdiv(n, tn) * tn
        xt_p = jnp.pad(xt, ((0, 0), (0, n_pad - n), (0, 0)))

    out_t = pl.pallas_call(
        _vector_layer_norm_kernel,
        out_shape=jax.ShapeDtypeStruct((3, n_pad, c), x.dtype),
        grid=(n_pad // tn,),
        in_specs=[
            pl.BlockSpec((3, tn, c), lambda i: (0, i, 0)),   # x (row tile)
            pl.BlockSpec((1, c), lambda i: (0, 0)),          # gamma (resident)
        ],
        out_specs=pl.BlockSpec((3, tn, c), lambda i: (0, i, 0)),
        compiler_params=pltpu.CompilerParams(
            dimension_semantics=("parallel",),
        ),
    )(xt_p, gamma_arr)

    out_t = out_t[:, :n, :]
    return jnp.transpose(out_t, (1, 2, 0))                  # back to (N, C, 3)


class VectorLayerNorm:
    """JAX/Pallas port of the PyTorch VectorLayerNorm module."""

    def __init__(self, n_channels, learnable_weight=True, dtype=jnp.float32):
        self.n_channels = n_channels
        self.gamma = (
            jnp.ones((1, n_channels, 1), dtype) if learnable_weight else None
        )

    def __call__(self, x):
        g = None if self.gamma is None else self.gamma[:, :, 0]  # (1, C)
        return vector_layer_norm(x, g)


def _reference_vector_layer_norm(x, gamma):
    """Pure-JAX reference mirroring the PyTorch forward exactly."""
    norm2 = jnp.maximum(jnp.sum(x * x, axis=-1, keepdims=True), _EPS)
    rms = jnp.sqrt(jnp.mean(norm2, axis=-2, keepdims=True))
    out = x / rms
    if gamma is not None:
        out = out * gamma
    return out


if __name__ == "__main__":
    key = jax.random.PRNGKey(0)
    k_x, k_g = jax.random.split(key)

    # Small shapes consistent with the module: N nodes, C vector channels, 3 xyz.
    N, C = 20, 32
    x = jax.random.normal(k_x, (N, C, 3), dtype=jnp.float32)

    # Learnable-weight path with a non-trivial gamma to exercise the scale.
    ln = VectorLayerNorm(C, learnable_weight=True)
    ln.gamma = 1.0 + 0.1 * jax.random.normal(k_g, (1, C, 1), dtype=jnp.float32)

    # Use a small row tile so the grid / padding path is exercised (20 -> 24 rows).
    out = vector_layer_norm(x, ln.gamma[:, :, 0], block_rows=8)
    out = jax.block_until_ready(out)

    ref = _reference_vector_layer_norm(x, ln.gamma)
    assert out.shape == x.shape
    assert bool(jnp.all(jnp.isfinite(out)))
    assert bool(jnp.allclose(out, ref, rtol=1e-5, atol=1e-5))

    # No-gamma path (learnable_weight=False).
    ln_plain = VectorLayerNorm(C, learnable_weight=False)
    out_plain = jax.block_until_ready(ln_plain(x))
    ref_plain = _reference_vector_layer_norm(x, None)
    assert bool(jnp.allclose(out_plain, ref_plain, rtol=1e-5, atol=1e-5))

    print("KERNEL_OK")
</pallas_src>

<mosaic_0001>
module attributes {stable_mosaic.version = 11 : i64} {
  func.func @_vector_layer_norm_kernel(%arg0: i32, %arg1: memref<3x8x32xf32, #tpu.memory_space<vmem>>, %arg2: memref<1x32xf32, #tpu.memory_space<vmem>>, %arg3: memref<3x8x32xf32, #tpu.memory_space<vmem>>) attributes {dimension_semantics = [#tpu.dimension_semantics<parallel>], iteration_bounds = array<i64: 3>, scalar_prefetch = 0 : i64, scratch_operands = 0 : i64, tpu.core_type = #tpu.core_type<tc>, window_params = [{transform_indices = @transform_0, window_bounds = array<i64: 3, 8, 32>}, {pipeline_mode = #tpu.pipeline_mode<synchronous>, transform_indices = @transform_1, window_bounds = array<i64: 1, 32>}, {transform_indices = @transform_2, window_bounds = array<i64: 3, 8, 32>}]} {
    %c0 = arith.constant 0 : index
    %c0_0 = arith.constant 0 : index
    %c0_1 = arith.constant 0 : index
    %0 = vector.load %arg1[%c0, %c0_0, %c0_1] : memref<3x8x32xf32, #tpu.memory_space<vmem>>, vector<3x8x32xf32>
    %1 = arith.mulf %0, %0 : vector<3x8x32xf32>
    %2 = vector.extract_strided_slice %1 {offsets = [0, 0, 0], sizes = [1, 8, 32], strides = [1, 1, 1]} : vector<3x8x32xf32> to vector<1x8x32xf32>
    %3 = vector.shape_cast %2 : vector<1x8x32xf32> to vector<8x32xf32>
    %4 = vector.extract_strided_slice %1 {offsets = [1, 0, 0], sizes = [1, 8, 32], strides = [1, 1, 1]} : vector<3x8x32xf32> to vector<1x8x32xf32>
    %5 = vector.shape_cast %4 : vector<1x8x32xf32> to vector<8x32xf32>
    %6 = arith.addf %3, %5 : vector<8x32xf32>
    %7 = vector.extract_strided_slice %1 {offsets = [2, 0, 0], sizes = [1, 8, 32], strides = [1, 1, 1]} : vector<3x8x32xf32> to vector<1x8x32xf32>
    %8 = vector.shape_cast %7 : vector<1x8x32xf32> to vector<8x32xf32>
    %9 = arith.addf %6, %8 : vector<8x32xf32>
    %cst = arith.constant 9.99999993E-9 : f32
    %10 = vector.broadcast %cst : f32 to vector<8x32xf32>
    %11 = arith.maximumf %9, %10 : vector<8x32xf32>
    %cst_2 = arith.constant dense<0.000000e+00> : vector<8xf32>
    %12 = vector.multi_reduction <add>, %11, %cst_2 [1] : vector<8x32xf32> to vector<8xf32>
    %13 = vector.shape_cast %12 : vector<8xf32> to vector<8x1xf32>
    %cst_3 = arith.constant 3.200000e+01 : f32
    %14 = vector.broadcast %cst_3 : f32 to vector<8x1xf32>
    %15 = arith.divf %13, %14 : vector<8x1xf32>
    %16 = math.rsqrt %15 : vector<8x1xf32>
    %c0_4 = arith.constant 0 : index
    %c0_5 = arith.constant 0 : index
    %17 = vector.load %arg2[%c0_4, %c0_5] : memref<1x32xf32, #tpu.memory_space<vmem>>, vector<1x32xf32>
    %18 = vector.broadcast %16 : vector<8x1xf32> to vector<8x32xf32>
    %19 = vector.broadcast %17 : vector<1x32xf32> to vector<8x32xf32>
    %20 = arith.mulf %18, %19 : vector<8x32xf32>
    %21 = vector.shape_cast %20 : vector<8x32xf32> to vector<1x8x32xf32>
    %22 = vector.broadcast %21 : vector<1x8x32xf32> to vector<3x8x32xf32>
    %23 = arith.mulf %0, %22 : vector<3x8x32xf32>
    %c0_6 = arith.constant 0 : index
    %c0_7 = arith.constant 0 : index
    %c0_8 = arith.constant 0 : index
    %24 = vector.load %arg3[%c0_6, %c0_7, %c0_8] : memref<3x8x32xf32, #tpu.memory_space<vmem>>, vector<3x8x32xf32>
    tpu.vector_store %arg3[%c0_6, %c0_7, %c0_8], %23 {strides = array<i32>} : memref<3x8x32xf32, #tpu.memory_space<vmem>>, vector<3x8x32xf32>,
    return
  }
  func.func @transform_0(%arg0: i32) -> (i32, i32, i32) {
    %c0_i32 = arith.constant 0 : i32
    %c0_i32_0 = arith.constant 0 : i32
    %c0_i32_1 = arith.constant 0 : i32
    return %c0_i32, %arg0, %c0_i32_0 : i32, i32, i32
  }
  func.func @transform_1(%arg0: i32) -> (i32, i32) {
    %c0_i32 = arith.constant 0 : i32
    %c0_i32_0 = arith.constant 0 : i32
    %c0_i32_1 = arith.constant 0 : i32
    return %c0_i32, %c0_i32_0 : i32, i32
  }
  func.func @transform_2(%arg0: i32) -> (i32, i32, i32) {
    %c0_i32 = arith.constant 0 : i32
    %c0_i32_0 = arith.constant 0 : i32
    %c0_i32_1 = arith.constant 0 : i32
    return %c0_i32, %arg0, %c0_i32_0 : i32, i32, i32
  }
}

</mosaic_0001>

<bundles_post_ra>
// kernel: tpu_custom_call.1
= control target key start
LH: loop header
LB: loop body
LE: loop exit
PB: predicated region body
PF: predicated region fallthrough
CT: control target
= control target key end

     0   :  { %7 = vsyncpa [#allocation3], 0  ;;  %s626_s0 = inlined_call_operand.hbm [shape: f32[3,24,32], index: 0, kind: input, shape index: {}]   ;;  %s627_s1 = inlined_call_operand.vmem [shape: f32[1,32], index: 1, kind: input, shape index: {}]   ;;  %s628_s2 = inlined_call_operand.hbm [shape: f32[3,24,32], index: 2, kind: output, shape index: {}]  }
   0x1   :  { %9 = vsyncpa [#allocation3 + $0x1], 0 }
   0x2   :  { %10 = vsyncpa [#allocation4], 0 }
   0x3   :  { %12 = vsyncpa [#allocation4 + $0x1], 0  ;;  %s463_s9 = smov 0   ;;  %s465_s10 = smov 0  }
   0x4   :  { %s467_s11 = smov 0   ;;  %s469_s12 = smov 0  }
   0x5 LB: > { %s484_s13 = sadd.s32 4294967295, %s438_s12   ;;  %s277_s14 = sadd.s32 4294967294, %s438_s12   ;;  %s438_s12 = sphi %s469_s12, %s640_s12   ;;  %s434_s11 = sphi %s467_s11, %s639_s11   ;;  %s430_s10 = sphi %s465_s10, %s638_s10   ;;  %s426_s9 = sphi %s463_s9, %s637_s9  }
   0x6   : > { %s488_s15 = sadd.s32 1, %s438_s12   ;;  %s25_s16 = sadd.s32 1, %s434_s11 }
   0x7   : > { %s22_s17 = ssub.s32 %s438_s12, %s488_s15  ;;  %p32_p0 = scmp.ne.s32.totalorder %s434_s11, %s430_s10 }
   0x8   : > { %p23_p1 = scmp.eq.s32.totalorder %s22_s17, 0  ;;  %p33_p2 = scmp.eq.s32.totalorder %s438_s12, 0 }
   0x9   : > { %p38_p3 = scmp.ne.s32.totalorder %s430_s10, %s426_s9  ;;  %p39_p4 = scmp.eq.s32.totalorder %s484_s13, 0 }
   0xa   : > { %s500_s18 = scalar_select %p23_p1, %s434_s11, %s25_s16  }
   0xb   : > { %p34_p5 = por %p33_p2, %p32_p0  ;;  %p502_p6 = por %p39_p4, %p38_p3 }
   0xc   : > { %p83_p7 = scmp.eq.s32.totalorder %s484_s13, 2  ;;  %p89_p8 = scmp.eq.s32.totalorder %s277_s14, 2 }
   0xd   : > { %p300_p9 = scmp.lt.s32.totalorder %s438_s12, 3  ;;  %s112_s22 = sand.u32 1, %s434_s11  }
   0xe   : > { %p508_p10 = por %p83_p7, %p32_p0  ;;  %p512_p11 = por %p89_p8, %p38_p3 }
   0xf   : > { %s280_s23 = sshll.u32 %s438_s12, 7  ;;  %s286_s24 = smul.u32 24, %s112_s22 }
  0x10   : > { %s631_s20 = scalar_select %p508_p10, 1, 0 }
  0x11   : > { %s632_s21 = scalar_select %p512_p11, 1, 0 }
  0x12   : > { %s521_s27 = scalar_lea.hbm %s626_s0, %s280_s23  ;;  %p523_p12 = pnand %p300_p9, %p34_p5 }
  0x13   : > { %s116_s29 = scalar_lea.vmem [#allocation2], %s286_s24  ;;  %s530_s3 = scalar_lea.sflag [#allocation3], %s112_s22 }
  0x14   : > { %s122_s30 = sshll.u32 %s116_s29, 4  ;;  %s342_s4 = scalar_lea.hbm %s521_s27, 384  ;;  %s527_s30 = int_to_ptr.vmem [resolvable:$true] %s122_s30 }
  0x15   : > { %p343_p0 = scmp.ne.s32.totalorder %s521_s27, %s342_s4  ;;  %p344_p1 = pneg %p523_p12 }
  0x16   : > { %s347_s7 = scalar_lea.hbm %s626_s0, 1152  ;;  %p348_p4 = scmp.lt.u32.totalorder %s521_s27, %s626_s0 }
  0x17   : > { %p345_p2 = pnand %p344_p1, %p343_p0  ;;  %p349_p5 = scmp.lt.u32.totalorder %s347_s7, %s342_s4 }
  0x18   : > { %p351_p8 = scmp.lt.u32.totalorder %s342_s4, %s521_s27 }
  0x19   : > { %p346_p3 = pneg %p345_p2  ;;  %p350_p7 = por %p349_p5, %p348_p4 }
  0x1b   : > { %p352_p9 = por %p351_p8, %p350_p7 }
  0x1d   : > { %p353_p13 = pnand %p352_p9, %p346_p3 }
  0x1f   : > { %356 = shalt.err (!%p353_p13)
}
  0x20   : > { %s357_s16 = scalar_lea.vmem %s527_s30, 384  ;;  %s440_s17 = smov [#allocation2]  }
  0x21   : > { %p358_p0 = scmp.ne.s32.totalorder %s527_s30, %s357_s16  ;;  %s362_s22 = sshll.u32 %s440_s17, 4  ;;  %s363_s22 = int_to_ptr.vmem [resolvable:$false] %s362_s22 }
  0x22   : > { %s364_s23 = scalar_lea.vmem %s363_s22, 768  ;;  %p365_p10 = scmp.lt.s32.totalorder %s527_s30, %s363_s22 }
  0x23   : > { %p360_p2 = pnand %p358_p0, %p344_p1  ;;  %p366_p4 = scmp.lt.s32.totalorder %s364_s23, %s357_s16 }
  0x25   : > { %p361_p11 = pneg %p360_p2  ;;  %p367_p5 = por %p366_p4, %p365_p10 }
  0x27   : > { %p368_p7 = pnand %p367_p5, %p361_p11 }
  0x29   : > { %371 = shalt.err (!%p368_p7)
}
  0x2a   : > { %s441_s24 = smov 384   ;;  %s442_s25 = smov 128  }
  0x2b   : > { %s443_s26 = smov 8   ;;  %p130_p13 = scmp.lt.s32.totalorder %s438_s12, 4 }
  0x2c   : > { %295 = dma.hbm_to_vmem [thread:$0]  (!%p523_p12), %s521_s27, 384, %s527_s30, %s530_s3, %s441_s24, %s442_s25, %s443_s26  }
  0x2d   : > { %p634_p1 = scmp.ge.s32.totalorder %s438_s12, 1 }
  0x2f   : > { %p131_p3 = pnand %p634_p1, %p130_p13 }
  0x30   : > { %s562_s29 = sand.u32 (!%p131_p3), 1, %s430_s10  }
  0x31   : > { %134 = sbr.rel (%p131_p3) target bundleno = 243 (0xf3), region = 28  ;;  %s137_s5 = scalar_lea.sflag (!%p131_p3), [#allocation3], %s562_s29 }
  0x32   : > { %s287_s4 = smul.u32 (!%p131_p3), 24, %s562_s29 }
  0x34   : > { %s140_s6 = scalar_lea.vmem (!%p131_p3), [#allocation2], %s287_s4 }
  0x38   : > { %417 = dma.done.wait (%p502_p6), %s137_s5, 384  }
  0x39   : > { %419 = vsyncadd (%p502_p6), %s137_s5, 4294966912  ;;  %v161_v0 = vld [vmem:[%s140_s6] sm:$0xff]  ;;  %v162_v1 = vld [vmem:[%s140_s6 + $0x8] sm:$0xff]  ;;  %vm170_vm0 = vcmask 261120   ;;  %s283_s28 = sshll.u32 %s484_s13, 7  ;;  %s160_s30 = scalar_lea.vmem [#allocation5], %s287_s4 }
  0x3a   : > { %v163_v2 = vld [vmem:[%s140_s6 + $0x10] sm:$0xff]  ;;  %v164_v3 = vmul.f32 %v161_v0, %v161_v0  ;;  %v165_v4 = vmul.f32 %v162_v1, %v162_v1  ;;  %v282_v12 = vld [vmem:[%s627_s1] ss:$0 sm:$0xff]  ;;  %s204_s3 = sshll.u32 %s160_s30, 4  ;;  %s578_s14 = scalar_lea.hbm %s628_s2, %s283_s28  ;;  %s580_s3 = int_to_ptr.vmem [resolvable:$true] %s204_s3 }
  0x3b   : > { %v166_v5 = vmul.f32 %v163_v2, %v163_v2  ;;  %s192_s13 = scalar_lea.sflag [#allocation4], %s562_s29  ;;  %s372_s16 = scalar_lea.vmem %s580_s3, 384 }
  0x3c   : > { %v167_v6 = vadd.f32 %v165_v4, %v164_v3  ;;  %p373_p6 = scmp.ne.s32.totalorder %s580_s3, %s372_s16  ;;  %p635_p10 = scmp.ne.s32.totalorder %s631_s20, 0 }
  0x3d   : > { %s444_s17 = smov [#allocation5]  }
  0x3e   : > { %v168_v7 = vadd.f32 %v167_v6, %v166_v5  ;;  %p374_p11 = pnand %p373_p6, %p635_p10  ;;  %s376_s22 = sshll.u32 %s444_s17, 4  ;;  %s377_s22 = int_to_ptr.vmem [resolvable:$false] %s376_s22 }
  0x3f   : > { %s378_s23 = scalar_lea.vmem %s377_s22, 768  ;;  %p379_p8 = scmp.lt.s32.totalorder %s580_s3, %s377_s22 }
  0x40   : > { %v169_v8 = vmax.f32 %v168_v7, 1e-08  ;;  %p375_p12 = pneg %p374_p11  ;;  %p380_p9 = scmp.lt.s32.totalorder %s378_s23, %s372_s16 }
  0x42   : > { %v171_v9 = vsel %vm170_vm0, %v169_v8, 0.0  ;;  %p381_p0 = por %p380_p9, %p379_p8 }
  0x43   : > { %172 = vadd.xlane.f32.xlu0 %v171_v9 }
  0x44   : > { %p382_p2 = pnand %p381_p0, %p375_p12 }
  0xd0   : > { %v173_v10 = vpop.xlane.xlu0 %172 }
  0xd1   : > { %v175_v11 = vmul.f32 0.03125, %v173_v10 }
  0xd3   : > { %340 = vrsqrt.f32 %v175_v11 }
  0xdd   : > { %v341_v13 = vpop.eup %340 }
  0xde   : > { %v184_v14 = vmul.f32 %v341_v13, %v282_v12 }
  0xe0   : > { %v185_v15 = vmul.f32 %v184_v14, %v161_v0  ;;  %v186_v16 = vmul.f32 %v184_v14, %v162_v1  ;;  %v187_v17 = vmul.f32 %v184_v14, %v163_v2 }
  0xe2   : > { %188 = vst.msk [vmem:[%s160_s30] sm:$0xff] %vm170_vm0, %v185_v15  ;;  %189 = vst.msk [vmem:[%s160_s30 + $0x8] sm:$0xff] %vm170_vm0, %v186_v16 }
  0xe3   : > { %190 = vst.msk [vmem:[%s160_s30 + $0x10] sm:$0xff] %vm170_vm0, %v187_v17 }
  0xe4   : > { %385 = shalt.err (!%p382_p2)
}
  0xe5   : > { %s386_s24 = scalar_lea.hbm %s578_s14, 384  ;;  %s390_s4 = scalar_lea.hbm %s628_s2, 1152 }
  0xe6   : > { %p387_p4 = scmp.ne.s32.totalorder %s578_s14, %s386_s24  ;;  %p391_p13 = scmp.lt.u32.totalorder %s578_s14, %s628_s2 }
  0xe7   : > { %p392_p1 = scmp.lt.u32.totalorder %s390_s4, %s386_s24  ;;  %p394_p6 = scmp.lt.u32.totalorder %s386_s24, %s578_s14 }
  0xe8   : > { %p388_p5 = pnand %p387_p4, %p635_p10 }
  0xe9   : > { %p393_p3 = por %p392_p1, %p391_p13 }
  0xea   : > { %p389_p7 = pneg %p388_p5 }
  0xeb   : > { %p395_p11 = por %p394_p6, %p393_p3 }
  0xed   : > { %p396_p12 = pnand %p395_p11, %p389_p7 }
  0xef   : > { %399 = shalt.err (!%p396_p12)
}
  0xf0   : > { %s445_s19 = smov 128   ;;  %s446_s27 = smov 384  }
  0xf1   : > { %s447_s28 = smov 8  }
  0xf2   : > { %290 = dma.vmem_to_hbm [thread:$0]  (%p635_p10), %s580_s3, 384, %s578_s14, %s192_s13, %s445_s19, %s446_s27, %s447_s28  }
  0xf3 PF: > { %p301_p8 = scmp.ge.s32.totalorder %s438_s12, 2  ;;  %s219_s30 = sand.u32 1, %s426_s9  }
  0xf4   : > { %p636_p9 = scmp.ne.s32.totalorder %s632_s21, 0  ;;  %s220_s7 = scalar_lea.sflag [#allocation4], %s219_s30 }
  0xf6   : > { %p297_p0 = pnand %p301_p8, %p636_p9 }
  0xf8   : > { %421 = dma.done.wait (!%p297_p0), %s220_s7, 384  }
  0xf9   : > { %423 = vsyncadd (!%p297_p0), %s220_s7, 4294966912  ;;  %p15_p2 = scmp.ge.s32.totalorder %s488_s15, 5   ;;  %s637_s9 = smov %s430_s10 }
  0xfa   : > { %s638_s10 = smov %s434_s11  ;;  %s639_s11 = smov %s500_s18 }
  0xfb   : > { %s640_s12 = smov %s488_s15  ;;  %17 = sbr.rel (!%p15_p2) target bundleno = 5 (0x5), region = 73 }
 0x102   :  { %225 = vsyncpa [#allocation3], 1 }
 0x103   :  { %227 = vsyncpa [#allocation3 + $0x1], 1 }
 0x104   :  { %228 = vsyncpa [#allocation4], 1 }
 0x105   :  { %230 = vsyncpa [#allocation4 + $0x1], 1 }

</bundles_post_ra>
